<compile_context>
chip_gen: v7x
topology: tpu7x:2x2x1
jax: 0.10.0
libtpu: 0.0.40
codegen_flags: <defaults>
</compile_context>

<pallas_src>
import jax
import jax.numpy as jnp
import numpy as np
from jax.experimental import pallas as pl
from jax.experimental.pallas import tpu as pltpu

INPUT_SIZE = 20
HIDDEN = 10
NUM_LAYERS = 3
OUT_SIZE = 1

G = NUM_LAYERS * HIDDEN          # 30 lanes per gate (i/f/g/o), layers concatenated
LANES = 128                      # slab lane width (full vreg width, contiguous DMA)

# LHS / panel row layout (all 8-aligned where it matters):
X_OFF = 0                        # rows  0:20  x_t
H_OFF = INPUT_SIZE               # rows 20:50  [h_layer0 | h_layer1 | h_layer2]
PANEL_ROWS = 56                  # rows 50:56  zero pad (keeps slices 8-row aligned)
BIAS_ROW = 56                    # slab row 56: packed bias (all layers + head bias)
HEAD_ROW = 57                    # slab row 57, lanes 0:10: fused head weight (row form)
SLAB_ROWS = 64

# Panel gate-column layout (permuted so state stays contiguous per layer):
#   lanes   0:30  -> i gates [l0|l1|l2]     (0.5-scaled)
#   lanes  30:60  -> f gates                (0.5-scaled)
#   lanes  60:90  -> g gates                (unscaled)
#   lanes 90:120  -> o gates                (0.5-scaled)
#   lane    120   -> fused head column (pred rides in the matmul)
HEAD_COL = 4 * G                 # 120


def _genrand_kernel(x_ref, slab_ref, out_ref):
    NT = x_ref.shape[0]          # wavefront ticks = T + NUM_LAYERS - 1 (trace-time constant)
    H = HIDDEN

    panel = slab_ref[0:PANEL_ROWS, :]                  # (56, 128) fused weight panel
    bias = slab_ref[BIAS_ROW:BIAS_ROW + 1, :]          # (1, 128)  packed biases (+ head bias)
    head_w = slab_ref[HEAD_ROW:HEAD_ROW + 1, 0:H]      # (1, 10)   fused head weight (row form)
    zpad = jnp.zeros((1, PANEL_ROWS - INPUT_SIZE - G), jnp.float32)   # (1, 6)

    # Wavefront state: after tick w, lanes l*H:(l+1)*H hold h/c of layer l at
    # step (w - l).  All three layers advance together each tick.
    h = jnp.zeros((1, G), jnp.float32)
    c = jnp.zeros((1, G), jnp.float32)
    preds = []

    for w in range(NT):                                # statically unrolled
        xt = x_ref[w:w + 1, :]                         # (1, 20) (zero-padded past T)
        lhs = jnp.concatenate([xt, h, zpad], axis=1)   # (1, 56)
        # ONE matmul per tick: input projections + recurrent projections for
        # all active layers, plus the head column, in a single MXU push.
        gates = jnp.dot(lhs, panel,
                        preferred_element_type=jnp.float32) + bias      # (1, 128)

        # Head column: gates[:, 120] = h_{2, w-3} . w_head + b_head = pred_{w-3}
        if w >= NUM_LAYERS:
            preds.append(gates[:, HEAD_COL:HEAD_COL + 1])

        # Single EUP pass over all 120 gate lanes; i/f/o weights were
        # pre-scaled by 0.5, so sigmoid(z) = 0.5 * (tanh(z/2) + 1).
        tg = jnp.tanh(gates[:, 0:4 * G])               # (1, 120)
        i_g = tg[:, 0 * G:1 * G] * 0.5 + 0.5
        f_g = tg[:, 1 * G:2 * G] * 0.5 + 0.5
        g_g = tg[:, 2 * G:3 * G]
        o_g = tg[:, 3 * G:4 * G] * 0.5 + 0.5
        c = f_g * c + i_g * g_g
        h = o_g * jnp.tanh(c)                          # second (and last) EUP pass

        # Startup masking: layer l only starts at tick l; keep its h/c at the
        # zero initial state until then (end-of-sequence garbage lanes never
        # feed a valid node, so no masking is needed there).
        if w < NUM_LAYERS - 1:
            keep = (w + 1) * H
            tail = jnp.zeros((1, G - keep), jnp.float32)
            h = jnp.concatenate([h[:, 0:keep], tail], axis=1)
            c = jnp.concatenate([c[:, 0:keep], tail], axis=1)

    # Last step's prediction from the final layer-2 hidden state
    # (its head value would only appear one tick past the loop).
    h2_last = h[:, (NUM_LAYERS - 1) * H:NUM_LAYERS * H]                  # (1, 10)
    pred_last = jnp.sum(h2_last * head_w, axis=-1, keepdims=True) \
        + bias[:, HEAD_COL:HEAD_COL + 1]
    preds.append(pred_last)

    # Lane-dense (1, T) store; wrapper reshapes back to (T, 1).
    out_ref[...] = jnp.concatenate(preds, axis=1).astype(out_ref.dtype)


def init_params(key):
    """Deterministic parameter init, same shapes / bounds as PyTorch defaults."""
    k = 1.0 / np.sqrt(HIDDEN)
    params = {}
    keys = jax.random.split(key, 4 * NUM_LAYERS + 4)
    ki = 0
    for layer in range(NUM_LAYERS):
        in_dim = INPUT_SIZE if layer == 0 else HIDDEN
        w_ih = jax.random.uniform(keys[ki], (4 * HIDDEN, in_dim), jnp.float32, -k, k); ki += 1
        w_hh = jax.random.uniform(keys[ki], (4 * HIDDEN, HIDDEN), jnp.float32, -k, k); ki += 1
        b_ih = jax.random.uniform(keys[ki], (4 * HIDDEN,), jnp.float32, -k, k); ki += 1
        b_hh = jax.random.uniform(keys[ki], (4 * HIDDEN,), jnp.float32, -k, k); ki += 1
        params[f"wih{layer}_t"] = w_ih.T                                 # (in, 4H)
        params[f"whh{layer}_t"] = w_hh.T                                 # (H, 4H)
        params[f"b{layer}"] = (b_ih + b_hh).reshape(1, 4 * HIDDEN)       # (1, 4H)
    k1 = 1.0 / np.sqrt(HIDDEN)
    w1 = jax.random.uniform(keys[ki], (10, HIDDEN), jnp.float32, -k1, k1); ki += 1
    b1 = jax.random.uniform(keys[ki], (10,), jnp.float32, -k1, k1); ki += 1
    k2 = 1.0 / np.sqrt(10)
    w2 = jax.random.uniform(keys[ki], (OUT_SIZE, 10), jnp.float32, -k2, k2); ki += 1
    b2 = jax.random.uniform(keys[ki], (OUT_SIZE,), jnp.float32, -k2, k2); ki += 1
    params["w1_t"] = w1.T            # (H, 10)
    params["bl1"] = b1.reshape(1, 10)
    params["w2_t"] = w2.T            # (10, 1)
    params["bl2"] = b2.reshape(1, OUT_SIZE)
    return params


def pack_params(params):
    """Pack all weights/biases into one (64, 128) block-structured panel slab.

    Row blocks (of the matmul panel, rows 0:56):
      rows  0:20  W_ih(layer0)                       -> layer-0 gate columns
      rows 20:30  W_hh(layer0) | W_ih(layer1)        -> layer-0 | layer-1 columns
      rows 30:40  W_hh(layer1) | W_ih(layer2)        -> layer-1 | layer-2 columns
      rows 40:50  W_hh(layer2) | fused head column   -> layer-2 columns | lane 120
    i/f/o columns (and biases) are pre-scaled by 0.5 for the single-tanh trick.
    """
    H = HIDDEN
    slab = np.zeros((SLAB_ROWS, LANES), np.float32)
    scales = (0.5, 0.5, 1.0, 0.5)    # i, f, g, o

    wih = [np.asarray(params[f"wih{l}_t"], np.float32) for l in range(NUM_LAYERS)]
    whh = [np.asarray(params[f"whh{l}_t"], np.float32) for l in range(NUM_LAYERS)]
    bvec = [np.asarray(params[f"b{l}"], np.float32)[0] for l in range(NUM_LAYERS)]

    def dst(l, k):                   # destination gate-column block (layer l, gate k)
        c0 = k * G + l * H
        return slice(c0, c0 + H)

    in_rows = [slice(X_OFF, X_OFF + INPUT_SIZE),          # layer-0 input: x_t
               slice(H_OFF + 0 * H, H_OFF + 1 * H),       # layer-1 input: h0
               slice(H_OFF + 1 * H, H_OFF + 2 * H)]       # layer-2 input: h1
    rec_rows = [slice(H_OFF + l * H, H_OFF + (l + 1) * H) for l in range(NUM_LAYERS)]

    for l in range(NUM_LAYERS):
        for k in range(4):
            s = scales[k]
            src = slice(k * H, (k + 1) * H)
            slab[in_rows[l], dst(l, k)] = s * wih[l][:, src]
            slab[rec_rows[l], dst(l, k)] = s * whh[l][:, src]
            slab[BIAS_ROW, dst(l, k)] = s * bvec[l][src]

    # Fused head (dropout = identity): pred = h2 @ (W1^T @ W2^T) + (b1 @ W2^T + b2)
    w_head = np.asarray(params["w1_t"] @ params["w2_t"], np.float32)                 # (10, 1)
    b_head = np.asarray(params["bl1"] @ params["w2_t"] + params["bl2"], np.float32)  # (1, 1)
    slab[rec_rows[NUM_LAYERS - 1], HEAD_COL] = w_head[:, 0]    # rides in the main matmul
    slab[BIAS_ROW, HEAD_COL] = b_head[0, 0]
    slab[HEAD_ROW, 0:H] = w_head[:, 0]                         # row form for the last step
    return jnp.asarray(slab)


@jax.jit
def gen_rand_forward(input_seq, param_slab):
    L = input_seq.shape[0]
    assert L == INPUT_SIZE, "len(input_seq) must equal LSTM input_size"
    # Mirror PyTorch: input_seq.view(-1, 1, len(input_seq)) (row-major), batch=1.
    x = input_seq.reshape(-1, 1, L).reshape(-1, L).astype(jnp.float32)   # (T, 20)
    T = x.shape[0]
    n_ticks = T + NUM_LAYERS - 1
    xp = jnp.pad(x, ((0, n_ticks - T), (0, 0)))          # ticks past T see zero inputs
    vmem = pl.BlockSpec(memory_space=pltpu.MemorySpace.VMEM)
    # Single invocation, whole-array VMEM residency: no grid, no tiling, no
    # extra buffering — the kernel is pure serial latency, ~33 KiB of data.
    out = pl.pallas_call(
        _genrand_kernel,
        out_shape=jax.ShapeDtypeStruct((1, T), jnp.float32),             # lane-dense output
        in_specs=[vmem, vmem],
        out_specs=vmem,
    )(xp, param_slab)
    return out.reshape(T, OUT_SIZE)


def gen_rand_reference(input_seq, params):
    """Pure-JAX reference matching nn.LSTM + sequential Linear semantics."""
    L = input_seq.shape[0]
    x = input_seq.reshape(-1, 1, L).reshape(-1, L).astype(jnp.float32)  # (T, 20)
    T = x.shape[0]
    layer_in = x
    for layer in range(NUM_LAYERS):
        wih_t = params[f"wih{layer}_t"]
        whh_t = params[f"whh{layer}_t"]
        b = params[f"b{layer}"]
        h = jnp.zeros((1, HIDDEN), jnp.float32)
        c = jnp.zeros((1, HIDDEN), jnp.float32)
        outs = []
        for t in range(T):
            gates = layer_in[t:t + 1] @ wih_t + h @ whh_t + b
            i_g = jax.nn.sigmoid(gates[:, 0:HIDDEN])
            f_g = jax.nn.sigmoid(gates[:, HIDDEN:2 * HIDDEN])
            g_g = jnp.tanh(gates[:, 2 * HIDDEN:3 * HIDDEN])
            o_g = jax.nn.sigmoid(gates[:, 3 * HIDDEN:4 * HIDDEN])
            c = f_g * c + i_g * g_g
            h = o_g * jnp.tanh(c)
            outs.append(h)
        layer_in = jnp.concatenate(outs, axis=0)
    y1 = layer_in @ params["w1_t"] + params["bl1"]
    return y1 @ params["w2_t"] + params["bl2"]


if __name__ == "__main__":
    key = jax.random.PRNGKey(0)
    k_param, k_data = jax.random.split(key)
    params = init_params(k_param)
    slab = pack_params(params)

    # input_seq: first dim = input_size = 20 (as required by len(input_seq)),
    # second dim 8 -> forward sees a sequence of T=8 steps, batch=1.
    input_seq = jax.random.normal(k_data, (INPUT_SIZE, 8), dtype=jnp.float32)

    pred = gen_rand_forward(input_seq, slab)
    pred = jax.block_until_ready(pred)

    ref = gen_rand_reference(input_seq, params)
    # Tolerance: both paths use default (bf16-input) MXU precision, but the
    # kernel fuses input/recurrent/head matmuls (different rounding points)
    # and precomputes W1@W2, so bit-level parity with the sequential reference
    # is not expected; structural bugs would produce O(0.1+) errors.
    np.testing.assert_allclose(np.asarray(pred), np.asarray(ref), rtol=1e-2, atol=1e-2)
    assert pred.shape == (8, 1)

    print("KERNEL_OK")
</pallas_src>

<mosaic_0001>
module attributes {stable_mosaic.version = 11 : i64} {
  func.func @_genrand_kernel(%arg0: memref<10x20xf32, #tpu.memory_space<vmem>>, %arg1: memref<64x128xf32, #tpu.memory_space<vmem>>, %arg2: memref<1x8xf32, #tpu.memory_space<vmem>>) attributes {dimension_semantics = [], scalar_prefetch = 0 : i64, scratch_operands = 0 : i64, tpu.core_type = #tpu.core_type<tc>} {
    %c0 = arith.constant 0 : index
    %c0_0 = arith.constant 0 : index
    %0 = vector.load %arg1[%c0, %c0_0] : memref<64x128xf32, #tpu.memory_space<vmem>>, vector<56x128xf32>
    %c56 = arith.constant 56 : index
    %c0_1 = arith.constant 0 : index
    %1 = vector.load %arg1[%c56, %c0_1] : memref<64x128xf32, #tpu.memory_space<vmem>>, vector<1x128xf32>
    %c57 = arith.constant 57 : index
    %c0_2 = arith.constant 0 : index
    %2 = vector.load %arg1[%c57, %c0_2] : memref<64x128xf32, #tpu.memory_space<vmem>>, vector<1x10xf32>
    %cst = arith.constant 0.000000e+00 : f32
    %3 = vector.broadcast %cst : f32 to vector<1x6xf32>
    %cst_3 = arith.constant 0.000000e+00 : f32
    %4 = vector.broadcast %cst_3 : f32 to vector<1x30xf32>
    %cst_4 = arith.constant 0.000000e+00 : f32
    %5 = vector.broadcast %cst_4 : f32 to vector<1x30xf32>
    %c0_5 = arith.constant 0 : index
    %c0_6 = arith.constant 0 : index
    %6 = vector.load %arg0[%c0_5, %c0_6] : memref<10x20xf32, #tpu.memory_space<vmem>>, vector<1x20xf32>
    %7 = tpu.concatenate %6, %4, %3 in 1 : vector<1x20xf32>, vector<1x30xf32>, vector<1x6xf32> -> vector<1x56xf32>
    %cst_7 = arith.constant dense<0.000000e+00> : vector<1x128xf32>
    %8 = tpu.matmul %7, %0, %cst_7 {dimension_numbers = #tpu.dot_dimension_numbers<[1], [0], [0], [1], [0, 0, 1, 1], [], []>} : vector<1x56xf32>, vector<56x128xf32>, vector<1x128xf32> -> vector<1x128xf32>
    %9 = arith.addf %8, %1 : vector<1x128xf32>
    %10 = vector.extract_strided_slice %9 {offsets = [0, 0], sizes = [1, 120], strides = [1, 1]} : vector<1x128xf32> to vector<1x120xf32>
    %11 = math.tanh %10 : vector<1x120xf32>
    %12 = vector.extract_strided_slice %11 {offsets = [0, 0], sizes = [1, 30], strides = [1, 1]} : vector<1x120xf32> to vector<1x30xf32>
    %cst_8 = arith.constant 5.000000e-01 : f32
    %13 = vector.broadcast %cst_8 : f32 to vector<1x30xf32>
    %14 = arith.mulf %12, %13 : vector<1x30xf32>
    %cst_9 = arith.constant 5.000000e-01 : f32
    %15 = vector.broadcast %cst_9 : f32 to vector<1x30xf32>
    %16 = arith.addf %14, %15 : vector<1x30xf32>
    %17 = vector.extract_strided_slice %11 {offsets = [0, 30], sizes = [1, 30], strides = [1, 1]} : vector<1x120xf32> to vector<1x30xf32>
    %cst_10 = arith.constant 5.000000e-01 : f32
    %18 = vector.broadcast %cst_10 : f32 to vector<1x30xf32>
    %19 = arith.mulf %17, %18 : vector<1x30xf32>
    %cst_11 = arith.constant 5.000000e-01 : f32
    %20 = vector.broadcast %cst_11 : f32 to vector<1x30xf32>
    %21 = arith.addf %19, %20 : vector<1x30xf32>
    %22 = vector.extract_strided_slice %11 {offsets = [0, 60], sizes = [1, 30], strides = [1, 1]} : vector<1x120xf32> to vector<1x30xf32>
    %23 = vector.extract_strided_slice %11 {offsets = [0, 90], sizes = [1, 30], strides = [1, 1]} : vector<1x120xf32> to vector<1x30xf32>
    %cst_12 = arith.constant 5.000000e-01 : f32
    %24 = vector.broadcast %cst_12 : f32 to vector<1x30xf32>
    %25 = arith.mulf %23, %24 : vector<1x30xf32>
    %cst_13 = arith.constant 5.000000e-01 : f32
    %26 = vector.broadcast %cst_13 : f32 to vector<1x30xf32>
    %27 = arith.addf %25, %26 : vector<1x30xf32>
    %28 = arith.mulf %21, %5 : vector<1x30xf32>
    %29 = arith.mulf %16, %22 : vector<1x30xf32>
    %30 = arith.addf %28, %29 : vector<1x30xf32>
    %31 = math.tanh %30 : vector<1x30xf32>
    %32 = arith.mulf %27, %31 : vector<1x30xf32>
    %cst_14 = arith.constant 0.000000e+00 : f32
    %33 = vector.broadcast %cst_14 : f32 to vector<1x20xf32>
    %34 = vector.extract_strided_slice %32 {offsets = [0, 0], sizes = [1, 10], strides = [1, 1]} : vector<1x30xf32> to vector<1x10xf32>
    %35 = tpu.concatenate %34, %33 in 1 : vector<1x10xf32>, vector<1x20xf32> -> vector<1x30xf32>
    %36 = vector.extract_strided_slice %30 {offsets = [0, 0], sizes = [1, 10], strides = [1, 1]} : vector<1x30xf32> to vector<1x10xf32>
    %37 = tpu.concatenate %36, %33 in 1 : vector<1x10xf32>, vector<1x20xf32> -> vector<1x30xf32>
    %c1 = arith.constant 1 : index
    %c0_15 = arith.constant 0 : index
    %38 = vector.load %arg0[%c1, %c0_15] : memref<10x20xf32, #tpu.memory_space<vmem>>, vector<1x20xf32>
    %39 = tpu.concatenate %38, %35, %3 in 1 : vector<1x20xf32>, vector<1x30xf32>, vector<1x6xf32> -> vector<1x56xf32>
    %cst_16 = arith.constant dense<0.000000e+00> : vector<1x128xf32>
    %40 = tpu.matmul %39, %0, %cst_16 {dimension_numbers = #tpu.dot_dimension_numbers<[1], [0], [0], [1], [0, 0, 1, 1], [], []>} : vector<1x56xf32>, vector<56x128xf32>, vector<1x128xf32> -> vector<1x128xf32>
    %41 = arith.addf %40, %1 : vector<1x128xf32>
    %42 = vector.extract_strided_slice %41 {offsets = [0, 0], sizes = [1, 120], strides = [1, 1]} : vector<1x128xf32> to vector<1x120xf32>
    %43 = math.tanh %42 : vector<1x120xf32>
    %44 = vector.extract_strided_slice %43 {offsets = [0, 0], sizes = [1, 30], strides = [1, 1]} : vector<1x120xf32> to vector<1x30xf32>
    %cst_17 = arith.constant 5.000000e-01 : f32
    %45 = vector.broadcast %cst_17 : f32 to vector<1x30xf32>
    %46 = arith.mulf %44, %45 : vector<1x30xf32>
    %cst_18 = arith.constant 5.000000e-01 : f32
    %47 = vector.broadcast %cst_18 : f32 to vector<1x30xf32>
    %48 = arith.addf %46, %47 : vector<1x30xf32>
    %49 = vector.extract_strided_slice %43 {offsets = [0, 30], sizes = [1, 30], strides = [1, 1]} : vector<1x120xf32> to vector<1x30xf32>
    %cst_19 = arith.constant 5.000000e-01 : f32
    %50 = vector.broadcast %cst_19 : f32 to vector<1x30xf32>
    %51 = arith.mulf %49, %50 : vector<1x30xf32>
    %cst_20 = arith.constant 5.000000e-01 : f32
    %52 = vector.broadcast %cst_20 : f32 to vector<1x30xf32>
    %53 = arith.addf %51, %52 : vector<1x30xf32>
    %54 = vector.extract_strided_slice %43 {offsets = [0, 60], sizes = [1, 30], strides = [1, 1]} : vector<1x120xf32> to vector<1x30xf32>
    %55 = vector.extract_strided_slice %43 {offsets = [0, 90], sizes = [1, 30], strides = [1, 1]} : vector<1x120xf32> to vector<1x30xf32>
    %cst_21 = arith.constant 5.000000e-01 : f32
    %56 = vector.broadcast %cst_21 : f32 to vector<1x30xf32>
    %57 = arith.mulf %55, %56 : vector<1x30xf32>
    %cst_22 = arith.constant 5.000000e-01 : f32
    %58 = vector.broadcast %cst_22 : f32 to vector<1x30xf32>
    %59 = arith.addf %57, %58 : vector<1x30xf32>
    %60 = arith.mulf %53, %37 : vector<1x30xf32>
    %61 = arith.mulf %48, %54 : vector<1x30xf32>
    %62 = arith.addf %60, %61 : vector<1x30xf32>
    %63 = math.tanh %62 : vector<1x30xf32>
    %64 = arith.mulf %59, %63 : vector<1x30xf32>
    %cst_23 = arith.constant 0.000000e+00 : f32
    %65 = vector.broadcast %cst_23 : f32 to vector<1x10xf32>
    %66 = vector.extract_strided_slice %64 {offsets = [0, 0], sizes = [1, 20], strides = [1, 1]} : vector<1x30xf32> to vector<1x20xf32>
    %67 = tpu.concatenate %66, %65 in 1 : vector<1x20xf32>, vector<1x10xf32> -> vector<1x30xf32>
    %68 = vector.extract_strided_slice %62 {offsets = [0, 0], sizes = [1, 20], strides = [1, 1]} : vector<1x30xf32> to vector<1x20xf32>
    %69 = tpu.concatenate %68, %65 in 1 : vector<1x20xf32>, vector<1x10xf32> -> vector<1x30xf32>
    %c2 = arith.constant 2 : index
    %c0_24 = arith.constant 0 : index
    %70 = vector.load %arg0[%c2, %c0_24] : memref<10x20xf32, #tpu.memory_space<vmem>>, vector<1x20xf32>
    %71 = tpu.concatenate %70, %67, %3 in 1 : vector<1x20xf32>, vector<1x30xf32>, vector<1x6xf32> -> vector<1x56xf32>
    %cst_25 = arith.constant dense<0.000000e+00> : vector<1x128xf32>
    %72 = tpu.matmul %71, %0, %cst_25 {dimension_numbers = #tpu.dot_dimension_numbers<[1], [0], [0], [1], [0, 0, 1, 1], [], []>} : vector<1x56xf32>, vector<56x128xf32>, vector<1x128xf32> -> vector<1x128xf32>
    %73 = arith.addf %72, %1 : vector<1x128xf32>
    %74 = vector.extract_strided_slice %73 {offsets = [0, 0], sizes = [1, 120], strides = [1, 1]} : vector<1x128xf32> to vector<1x120xf32>
    %75 = math.tanh %74 : vector<1x120xf32>
    %76 = vector.extract_strided_slice %75 {offsets = [0, 0], sizes = [1, 30], strides = [1, 1]} : vector<1x120xf32> to vector<1x30xf32>
    %cst_26 = arith.constant 5.000000e-01 : f32
    %77 = vector.broadcast %cst_26 : f32 to vector<1x30xf32>
    %78 = arith.mulf %76, %77 : vector<1x30xf32>
    %cst_27 = arith.constant 5.000000e-01 : f32
    %79 = vector.broadcast %cst_27 : f32 to vector<1x30xf32>
    %80 = arith.addf %78, %79 : vector<1x30xf32>
    %81 = vector.extract_strided_slice %75 {offsets = [0, 30], sizes = [1, 30], strides = [1, 1]} : vector<1x120xf32> to vector<1x30xf32>
    %cst_28 = arith.constant 5.000000e-01 : f32
    %82 = vector.broadcast %cst_28 : f32 to vector<1x30xf32>
    %83 = arith.mulf %81, %82 : vector<1x30xf32>
    %cst_29 = arith.constant 5.000000e-01 : f32
    %84 = vector.broadcast %cst_29 : f32 to vector<1x30xf32>
    %85 = arith.addf %83, %84 : vector<1x30xf32>
    %86 = vector.extract_strided_slice %75 {offsets = [0, 60], sizes = [1, 30], strides = [1, 1]} : vector<1x120xf32> to vector<1x30xf32>
    %87 = vector.extract_strided_slice %75 {offsets = [0, 90], sizes = [1, 30], strides = [1, 1]} : vector<1x120xf32> to vector<1x30xf32>
    %cst_30 = arith.constant 5.000000e-01 : f32
    %88 = vector.broadcast %cst_30 : f32 to vector<1x30xf32>
    %89 = arith.mulf %87, %88 : vector<1x30xf32>
    %cst_31 = arith.constant 5.000000e-01 : f32
    %90 = vector.broadcast %cst_31 : f32 to vector<1x30xf32>
    %91 = arith.addf %89, %90 : vector<1x30xf32>
    %92 = arith.mulf %85, %69 : vector<1x30xf32>
    %93 = arith.mulf %80, %86 : vector<1x30xf32>
    %94 = arith.addf %92, %93 : vector<1x30xf32>
    %95 = math.tanh %94 : vector<1x30xf32>
    %96 = arith.mulf %91, %95 : vector<1x30xf32>
    %c3 = arith.constant 3 : index
    %c0_32 = arith.constant 0 : index
    %97 = vector.load %arg0[%c3, %c0_32] : memref<10x20xf32, #tpu.memory_space<vmem>>, vector<1x20xf32>
    %98 = tpu.concatenate %97, %96, %3 in 1 : vector<1x20xf32>, vector<1x30xf32>, vector<1x6xf32> -> vector<1x56xf32>
    %cst_33 = arith.constant dense<0.000000e+00> : vector<1x128xf32>
    %99 = tpu.matmul %98, %0, %cst_33 {dimension_numbers = #tpu.dot_dimension_numbers<[1], [0], [0], [1], [0, 0, 1, 1], [], []>} : vector<1x56xf32>, vector<56x128xf32>, vector<1x128xf32> -> vector<1x128xf32>
    %100 = arith.addf %99, %1 : vector<1x128xf32>
    %101 = vector.extract_strided_slice %100 {offsets = [0, 120], sizes = [1, 1], strides = [1, 1]} : vector<1x128xf32> to vector<1x1xf32>
    %102 = vector.extract_strided_slice %100 {offsets = [0, 0], sizes = [1, 120], strides = [1, 1]} : vector<1x128xf32> to vector<1x120xf32>
    %103 = math.tanh %102 : vector<1x120xf32>
    %104 = vector.extract_strided_slice %103 {offsets = [0, 0], sizes = [1, 30], strides = [1, 1]} : vector<1x120xf32> to vector<1x30xf32>
    %cst_34 = arith.constant 5.000000e-01 : f32
    %105 = vector.broadcast %cst_34 : f32 to vector<1x30xf32>
    %106 = arith.mulf %104, %105 : vector<1x30xf32>
    %cst_35 = arith.constant 5.000000e-01 : f32
    %107 = vector.broadcast %cst_35 : f32 to vector<1x30xf32>
    %108 = arith.addf %106, %107 : vector<1x30xf32>
    %109 = vector.extract_strided_slice %103 {offsets = [0, 30], sizes = [1, 30], strides = [1, 1]} : vector<1x120xf32> to vector<1x30xf32>
    %cst_36 = arith.constant 5.000000e-01 : f32
    %110 = vector.broadcast %cst_36 : f32 to vector<1x30xf32>
    %111 = arith.mulf %109, %110 : vector<1x30xf32>
    %cst_37 = arith.constant 5.000000e-01 : f32
    %112 = vector.broadcast %cst_37 : f32 to vector<1x30xf32>
    %113 = arith.addf %111, %112 : vector<1x30xf32>
    %114 = vector.extract_strided_slice %103 {offsets = [0, 60], sizes = [1, 30], strides = [1, 1]} : vector<1x120xf32> to vector<1x30xf32>
    %115 = vector.extract_strided_slice %103 {offsets = [0, 90], sizes = [1, 30], strides = [1, 1]} : vector<1x120xf32> to vector<1x30xf32>
    %cst_38 = arith.constant 5.000000e-01 : f32
    %116 = vector.broadcast %cst_38 : f32 to vector<1x30xf32>
    %117 = arith.mulf %115, %116 : vector<1x30xf32>
    %cst_39 = arith.constant 5.000000e-01 : f32
    %118 = vector.broadcast %cst_39 : f32 to vector<1x30xf32>
    %119 = arith.addf %117, %118 : vector<1x30xf32>
    %120 = arith.mulf %113, %94 : vector<1x30xf32>
    %121 = arith.mulf %108, %114 : vector<1x30xf32>
    %122 = arith.addf %120, %121 : vector<1x30xf32>
    %123 = math.tanh %122 : vector<1x30xf32>
    %124 = arith.mulf %119, %123 : vector<1x30xf32>
    %c4 = arith.constant 4 : index
    %c0_40 = arith.constant 0 : index
    %125 = vector.load %arg0[%c4, %c0_40] : memref<10x20xf32, #tpu.memory_space<vmem>>, vector<1x20xf32>
    %126 = tpu.concatenate %125, %124, %3 in 1 : vector<1x20xf32>, vector<1x30xf32>, vector<1x6xf32> -> vector<1x56xf32>
    %cst_41 = arith.constant dense<0.000000e+00> : vector<1x128xf32>
    %127 = tpu.matmul %126, %0, %cst_41 {dimension_numbers = #tpu.dot_dimension_numbers<[1], [0], [0], [1], [0, 0, 1, 1], [], []>} : vector<1x56xf32>, vector<56x128xf32>, vector<1x128xf32> -> vector<1x128xf32>
    %128 = arith.addf %127, %1 : vector<1x128xf32>
    %129 = vector.extract_strided_slice %128 {offsets = [0, 120], sizes = [1, 1], strides = [1, 1]} : vector<1x128xf32> to vector<1x1xf32>
    %130 = vector.extract_strided_slice %128 {offsets = [0, 0], sizes = [1, 120], strides = [1, 1]} : vector<1x128xf32> to vector<1x120xf32>
    %131 = math.tanh %130 : vector<1x120xf32>
    %132 = vector.extract_strided_slice %131 {offsets = [0, 0], sizes = [1, 30], strides = [1, 1]} : vector<1x120xf32> to vector<1x30xf32>
    %cst_42 = arith.constant 5.000000e-01 : f32
    %133 = vector.broadcast %cst_42 : f32 to vector<1x30xf32>
    %134 = arith.mulf %132, %133 : vector<1x30xf32>
    %cst_43 = arith.constant 5.000000e-01 : f32
    %135 = vector.broadcast %cst_43 : f32 to vector<1x30xf32>
    %136 = arith.addf %134, %135 : vector<1x30xf32>
    %137 = vector.extract_strided_slice %131 {offsets = [0, 30], sizes = [1, 30], strides = [1, 1]} : vector<1x120xf32> to vector<1x30xf32>
    %cst_44 = arith.constant 5.000000e-01 : f32
    %138 = vector.broadcast %cst_44 : f32 to vector<1x30xf32>
    %139 = arith.mulf %137, %138 : vector<1x30xf32>
    %cst_45 = arith.constant 5.000000e-01 : f32
    %140 = vector.broadcast %cst_45 : f32 to vector<1x30xf32>
    %141 = arith.addf %139, %140 : vector<1x30xf32>
    %142 = vector.extract_strided_slice %131 {offsets = [0, 60], sizes = [1, 30], strides = [1, 1]} : vector<1x120xf32> to vector<1x30xf32>
    %143 = vector.extract_strided_slice %131 {offsets = [0, 90], sizes = [1, 30], strides = [1, 1]} : vector<1x120xf32> to vector<1x30xf32>
    %cst_46 = arith.constant 5.000000e-01 : f32
    %144 = vector.broadcast %cst_46 : f32 to vector<1x30xf32>
    %145 = arith.mulf %143, %144 : vector<1x30xf32>
    %cst_47 = arith.constant 5.000000e-01 : f32
    %146 = vector.broadcast %cst_47 : f32 to vector<1x30xf32>
    %147 = arith.addf %145, %146 : vector<1x30xf32>
    %148 = arith.mulf %141, %122 : vector<1x30xf32>
    %149 = arith.mulf %136, %142 : vector<1x30xf32>
    %150 = arith.addf %148, %149 : vector<1x30xf32>
    %151 = math.tanh %150 : vector<1x30xf32>
    %152 = arith.mulf %147, %151 : vector<1x30xf32>
    %c5 = arith.constant 5 : index
    %c0_48 = arith.constant 0 : index
    %153 = vector.load %arg0[%c5, %c0_48] : memref<10x20xf32, #tpu.memory_space<vmem>>, vector<1x20xf32>
    %154 = tpu.concatenate %153, %152, %3 in 1 : vector<1x20xf32>, vector<1x30xf32>, vector<1x6xf32> -> vector<1x56xf32>
    %cst_49 = arith.constant dense<0.000000e+00> : vector<1x128xf32>
    %155 = tpu.matmul %154, %0, %cst_49 {dimension_numbers = #tpu.dot_dimension_numbers<[1], [0], [0], [1], [0, 0, 1, 1], [], []>} : vector<1x56xf32>, vector<56x128xf32>, vector<1x128xf32> -> vector<1x128xf32>
    %156 = arith.addf %155, %1 : vector<1x128xf32>
    %157 = vector.extract_strided_slice %156 {offsets = [0, 120], sizes = [1, 1], strides = [1, 1]} : vector<1x128xf32> to vector<1x1xf32>
    %158 = vector.extract_strided_slice %156 {offsets = [0, 0], sizes = [1, 120], strides = [1, 1]} : vector<1x128xf32> to vector<1x120xf32>
    %159 = math.tanh %158 : vector<1x120xf32>
    %160 = vector.extract_strided_slice %159 {offsets = [0, 0], sizes = [1, 30], strides = [1, 1]} : vector<1x120xf32> to vector<1x30xf32>
    %cst_50 = arith.constant 5.000000e-01 : f32
    %161 = vector.broadcast %cst_50 : f32 to vector<1x30xf32>
    %162 = arith.mulf %160, %161 : vector<1x30xf32>
    %cst_51 = arith.constant 5.000000e-01 : f32
    %163 = vector.broadcast %cst_51 : f32 to vector<1x30xf32>
    %164 = arith.addf %162, %163 : vector<1x30xf32>
    %165 = vector.extract_strided_slice %159 {offsets = [0, 30], sizes = [1, 30], strides = [1, 1]} : vector<1x120xf32> to vector<1x30xf32>
    %cst_52 = arith.constant 5.000000e-01 : f32
    %166 = vector.broadcast %cst_52 : f32 to vector<1x30xf32>
    %167 = arith.mulf %165, %166 : vector<1x30xf32>
    %cst_53 = arith.constant 5.000000e-01 : f32
    %168 = vector.broadcast %cst_53 : f32 to vector<1x30xf32>
    %169 = arith.addf %167, %168 : vector<1x30xf32>
    %170 = vector.extract_strided_slice %159 {offsets = [0, 60], sizes = [1, 30], strides = [1, 1]} : vector<1x120xf32> to vector<1x30xf32>
    %171 = vector.extract_strided_slice %159 {offsets = [0, 90], sizes = [1, 30], strides = [1, 1]} : vector<1x120xf32> to vector<1x30xf32>
    %cst_54 = arith.constant 5.000000e-01 : f32
    %172 = vector.broadcast %cst_54 : f32 to vector<1x30xf32>
    %173 = arith.mulf %171, %172 : vector<1x30xf32>
    %cst_55 = arith.constant 5.000000e-01 : f32
    %174 = vector.broadcast %cst_55 : f32 to vector<1x30xf32>
    %175 = arith.addf %173, %174 : vector<1x30xf32>
    %176 = arith.mulf %169, %150 : vector<1x30xf32>
    %177 = arith.mulf %164, %170 : vector<1x30xf32>
    %178 = arith.addf %176, %177 : vector<1x30xf32>
    %179 = math.tanh %178 : vector<1x30xf32>
    %180 = arith.mulf %175, %179 : vector<1x30xf32>
    %c6 = arith.constant 6 : index
    %c0_56 = arith.constant 0 : index
    %181 = vector.load %arg0[%c6, %c0_56] : memref<10x20xf32, #tpu.memory_space<vmem>>, vector<1x20xf32>
    %182 = tpu.concatenate %181, %180, %3 in 1 : vector<1x20xf32>, vector<1x30xf32>, vector<1x6xf32> -> vector<1x56xf32>
    %cst_57 = arith.constant dense<0.000000e+00> : vector<1x128xf32>
    %183 = tpu.matmul %182, %0, %cst_57 {dimension_numbers = #tpu.dot_dimension_numbers<[1], [0], [0], [1], [0, 0, 1, 1], [], []>} : vector<1x56xf32>, vector<56x128xf32>, vector<1x128xf32> -> vector<1x128xf32>
    %184 = arith.addf %183, %1 : vector<1x128xf32>
    %185 = vector.extract_strided_slice %184 {offsets = [0, 120], sizes = [1, 1], strides = [1, 1]} : vector<1x128xf32> to vector<1x1xf32>
    %186 = vector.extract_strided_slice %184 {offsets = [0, 0], sizes = [1, 120], strides = [1, 1]} : vector<1x128xf32> to vector<1x120xf32>
    %187 = math.tanh %186 : vector<1x120xf32>
    %188 = vector.extract_strided_slice %187 {offsets = [0, 0], sizes = [1, 30], strides = [1, 1]} : vector<1x120xf32> to vector<1x30xf32>
    %cst_58 = arith.constant 5.000000e-01 : f32
    %189 = vector.broadcast %cst_58 : f32 to vector<1x30xf32>
    %190 = arith.mulf %188, %189 : vector<1x30xf32>
    %cst_59 = arith.constant 5.000000e-01 : f32
    %191 = vector.broadcast %cst_59 : f32 to vector<1x30xf32>
    %192 = arith.addf %190, %191 : vector<1x30xf32>
    %193 = vector.extract_strided_slice %187 {offsets = [0, 30], sizes = [1, 30], strides = [1, 1]} : vector<1x120xf32> to vector<1x30xf32>
    %cst_60 = arith.constant 5.000000e-01 : f32
    %194 = vector.broadcast %cst_60 : f32 to vector<1x30xf32>
    %195 = arith.mulf %193, %194 : vector<1x30xf32>
    %cst_61 = arith.constant 5.000000e-01 : f32
    %196 = vector.broadcast %cst_61 : f32 to vector<1x30xf32>
    %197 = arith.addf %195, %196 : vector<1x30xf32>
    %198 = vector.extract_strided_slice %187 {offsets = [0, 60], sizes = [1, 30], strides = [1, 1]} : vector<1x120xf32> to vector<1x30xf32>
    %199 = vector.extract_strided_slice %187 {offsets = [0, 90], sizes = [1, 30], strides = [1, 1]} : vector<1x120xf32> to vector<1x30xf32>
    %cst_62 = arith.constant 5.000000e-01 : f32
    %200 = vector.broadcast %cst_62 : f32 to vector<1x30xf32>
    %201 = arith.mulf %199, %200 : vector<1x30xf32>
    %cst_63 = arith.constant 5.000000e-01 : f32
    %202 = vector.broadcast %cst_63 : f32 to vector<1x30xf32>
    %203 = arith.addf %201, %202 : vector<1x30xf32>
    %204 = arith.mulf %197, %178 : vector<1x30xf32>
    %205 = arith.mulf %192, %198 : vector<1x30xf32>
    %206 = arith.addf %204, %205 : vector<1x30xf32>
    %207 = math.tanh %206 : vector<1x30xf32>
    %208 = arith.mulf %203, %207 : vector<1x30xf32>
    %c7 = arith.constant 7 : index
    %c0_64 = arith.constant 0 : index
    %209 = vector.load %arg0[%c7, %c0_64] : memref<10x20xf32, #tpu.memory_space<vmem>>, vector<1x20xf32>
    %210 = tpu.concatenate %209, %208, %3 in 1 : vector<1x20xf32>, vector<1x30xf32>, vector<1x6xf32> -> vector<1x56xf32>
    %cst_65 = arith.constant dense<0.000000e+00> : vector<1x128xf32>
    %211 = tpu.matmul %210, %0, %cst_65 {dimension_numbers = #tpu.dot_dimension_numbers<[1], [0], [0], [1], [0, 0, 1, 1], [], []>} : vector<1x56xf32>, vector<56x128xf32>, vector<1x128xf32> -> vector<1x128xf32>
    %212 = arith.addf %211, %1 : vector<1x128xf32>
    %213 = vector.extract_strided_slice %212 {offsets = [0, 120], sizes = [1, 1], strides = [1, 1]} : vector<1x128xf32> to vector<1x1xf32>
    %214 = vector.extract_strided_slice %212 {offsets = [0, 0], sizes = [1, 120], strides = [1, 1]} : vector<1x128xf32> to vector<1x120xf32>
    %215 = math.tanh %214 : vector<1x120xf32>
    %216 = vector.extract_strided_slice %215 {offsets = [0, 0], sizes = [1, 30], strides = [1, 1]} : vector<1x120xf32> to vector<1x30xf32>
    %cst_66 = arith.constant 5.000000e-01 : f32
    %217 = vector.broadcast %cst_66 : f32 to vector<1x30xf32>
    %218 = arith.mulf %216, %217 : vector<1x30xf32>
    %cst_67 = arith.constant 5.000000e-01 : f32
    %219 = vector.broadcast %cst_67 : f32 to vector<1x30xf32>
    %220 = arith.addf %218, %219 : vector<1x30xf32>
    %221 = vector.extract_strided_slice %215 {offsets = [0, 30], sizes = [1, 30], strides = [1, 1]} : vector<1x120xf32> to vector<1x30xf32>
    %cst_68 = arith.constant 5.000000e-01 : f32
    %222 = vector.broadcast %cst_68 : f32 to vector<1x30xf32>
    %223 = arith.mulf %221, %222 : vector<1x30xf32>
    %cst_69 = arith.constant 5.000000e-01 : f32
    %224 = vector.broadcast %cst_69 : f32 to vector<1x30xf32>
    %225 = arith.addf %223, %224 : vector<1x30xf32>
    %226 = vector.extract_strided_slice %215 {offsets = [0, 60], sizes = [1, 30], strides = [1, 1]} : vector<1x120xf32> to vector<1x30xf32>
    %227 = vector.extract_strided_slice %215 {offsets = [0, 90], sizes = [1, 30], strides = [1, 1]} : vector<1x120xf32> to vector<1x30xf32>
    %cst_70 = arith.constant 5.000000e-01 : f32
    %228 = vector.broadcast %cst_70 : f32 to vector<1x30xf32>
    %229 = arith.mulf %227, %228 : vector<1x30xf32>
    %cst_71 = arith.constant 5.000000e-01 : f32
    %230 = vector.broadcast %cst_71 : f32 to vector<1x30xf32>
    %231 = arith.addf %229, %230 : vector<1x30xf32>
    %232 = arith.mulf %225, %206 : vector<1x30xf32>
    %233 = arith.mulf %220, %226 : vector<1x30xf32>
    %234 = arith.addf %232, %233 : vector<1x30xf32>
    %235 = math.tanh %234 : vector<1x30xf32>
    %236 = arith.mulf %231, %235 : vector<1x30xf32>
    %c8 = arith.constant 8 : index
    %c0_72 = arith.constant 0 : index
    %237 = vector.load %arg0[%c8, %c0_72] : memref<10x20xf32, #tpu.memory_space<vmem>>, vector<1x20xf32>
    %238 = tpu.concatenate %237, %236, %3 in 1 : vector<1x20xf32>, vector<1x30xf32>, vector<1x6xf32> -> vector<1x56xf32>
    %cst_73 = arith.constant dense<0.000000e+00> : vector<1x128xf32>
    %239 = tpu.matmul %238, %0, %cst_73 {dimension_numbers = #tpu.dot_dimension_numbers<[1], [0], [0], [1], [0, 0, 1, 1], [], []>} : vector<1x56xf32>, vector<56x128xf32>, vector<1x128xf32> -> vector<1x128xf32>
    %240 = arith.addf %239, %1 : vector<1x128xf32>
    %241 = vector.extract_strided_slice %240 {offsets = [0, 120], sizes = [1, 1], strides = [1, 1]} : vector<1x128xf32> to vector<1x1xf32>
    %242 = vector.extract_strided_slice %240 {offsets = [0, 0], sizes = [1, 120], strides = [1, 1]} : vector<1x128xf32> to vector<1x120xf32>
    %243 = math.tanh %242 : vector<1x120xf32>
    %244 = vector.extract_strided_slice %243 {offsets = [0, 0], sizes = [1, 30], strides = [1, 1]} : vector<1x120xf32> to vector<1x30xf32>
    %cst_74 = arith.constant 5.000000e-01 : f32
    %245 = vector.broadcast %cst_74 : f32 to vector<1x30xf32>
    %246 = arith.mulf %244, %245 : vector<1x30xf32>
    %cst_75 = arith.constant 5.000000e-01 : f32
    %247 = vector.broadcast %cst_75 : f32 to vector<1x30xf32>
    %248 = arith.addf %246, %247 : vector<1x30xf32>
    %249 = vector.extract_strided_slice %243 {offsets = [0, 30], sizes = [1, 30], strides = [1, 1]} : vector<1x120xf32> to vector<1x30xf32>
    %cst_76 = arith.constant 5.000000e-01 : f32
    %250 = vector.broadcast %cst_76 : f32 to vector<1x30xf32>
    %251 = arith.mulf %249, %250 : vector<1x30xf32>
    %cst_77 = arith.constant 5.000000e-01 : f32
    %252 = vector.broadcast %cst_77 : f32 to vector<1x30xf32>
    %253 = arith.addf %251, %252 : vector<1x30xf32>
    %254 = vector.extract_strided_slice %243 {offsets = [0, 60], sizes = [1, 30], strides = [1, 1]} : vector<1x120xf32> to vector<1x30xf32>
    %255 = vector.extract_strided_slice %243 {offsets = [0, 90], sizes = [1, 30], strides = [1, 1]} : vector<1x120xf32> to vector<1x30xf32>
    %cst_78 = arith.constant 5.000000e-01 : f32
    %256 = vector.broadcast %cst_78 : f32 to vector<1x30xf32>
    %257 = arith.mulf %255, %256 : vector<1x30xf32>
    %cst_79 = arith.constant 5.000000e-01 : f32
    %258 = vector.broadcast %cst_79 : f32 to vector<1x30xf32>
    %259 = arith.addf %257, %258 : vector<1x30xf32>
    %260 = arith.mulf %253, %234 : vector<1x30xf32>
    %261 = arith.mulf %248, %254 : vector<1x30xf32>
    %262 = arith.addf %260, %261 : vector<1x30xf32>
    %263 = math.tanh %262 : vector<1x30xf32>
    %264 = arith.mulf %259, %263 : vector<1x30xf32>
    %c9 = arith.constant 9 : index
    %c0_80 = arith.constant 0 : index
    %265 = vector.load %arg0[%c9, %c0_80] : memref<10x20xf32, #tpu.memory_space<vmem>>, vector<1x20xf32>
    %266 = tpu.concatenate %265, %264, %3 in 1 : vector<1x20xf32>, vector<1x30xf32>, vector<1x6xf32> -> vector<1x56xf32>
    %cst_81 = arith.constant dense<0.000000e+00> : vector<1x128xf32>
    %267 = tpu.matmul %266, %0, %cst_81 {dimension_numbers = #tpu.dot_dimension_numbers<[1], [0], [0], [1], [0, 0, 1, 1], [], []>} : vector<1x56xf32>, vector<56x128xf32>, vector<1x128xf32> -> vector<1x128xf32>
    %268 = arith.addf %267, %1 : vector<1x128xf32>
    %269 = vector.extract_strided_slice %268 {offsets = [0, 120], sizes = [1, 1], strides = [1, 1]} : vector<1x128xf32> to vector<1x1xf32>
    %270 = vector.extract_strided_slice %268 {offsets = [0, 0], sizes = [1, 120], strides = [1, 1]} : vector<1x128xf32> to vector<1x120xf32>
    %271 = math.tanh %270 : vector<1x120xf32>
    %272 = vector.extract_strided_slice %271 {offsets = [0, 0], sizes = [1, 30], strides = [1, 1]} : vector<1x120xf32> to vector<1x30xf32>
    %cst_82 = arith.constant 5.000000e-01 : f32
    %273 = vector.broadcast %cst_82 : f32 to vector<1x30xf32>
    %274 = arith.mulf %272, %273 : vector<1x30xf32>
    %cst_83 = arith.constant 5.000000e-01 : f32
    %275 = vector.broadcast %cst_83 : f32 to vector<1x30xf32>
    %276 = arith.addf %274, %275 : vector<1x30xf32>
    %277 = vector.extract_strided_slice %271 {offsets = [0, 30], sizes = [1, 30], strides = [1, 1]} : vector<1x120xf32> to vector<1x30xf32>
    %cst_84 = arith.constant 5.000000e-01 : f32
    %278 = vector.broadcast %cst_84 : f32 to vector<1x30xf32>
    %279 = arith.mulf %277, %278 : vector<1x30xf32>
    %cst_85 = arith.constant 5.000000e-01 : f32
    %280 = vector.broadcast %cst_85 : f32 to vector<1x30xf32>
    %281 = arith.addf %279, %280 : vector<1x30xf32>
    %282 = vector.extract_strided_slice %271 {offsets = [0, 60], sizes = [1, 30], strides = [1, 1]} : vector<1x120xf32> to vector<1x30xf32>
    %283 = vector.extract_strided_slice %271 {offsets = [0, 90], sizes = [1, 30], strides = [1, 1]} : vector<1x120xf32> to vector<1x30xf32>
    %cst_86 = arith.constant 5.000000e-01 : f32
    %284 = vector.broadcast %cst_86 : f32 to vector<1x30xf32>
    %285 = arith.mulf %283, %284 : vector<1x30xf32>
    %cst_87 = arith.constant 5.000000e-01 : f32
    %286 = vector.broadcast %cst_87 : f32 to vector<1x30xf32>
    %287 = arith.addf %285, %286 : vector<1x30xf32>
    %288 = arith.mulf %281, %262 : vector<1x30xf32>
    %289 = arith.mulf %276, %282 : vector<1x30xf32>
    %290 = arith.addf %288, %289 : vector<1x30xf32>
    %291 = math.tanh %290 : vector<1x30xf32>
    %292 = arith.mulf %287, %291 : vector<1x30xf32>
    %293 = vector.extract_strided_slice %292 {offsets = [0, 20], sizes = [1, 10], strides = [1, 1]} : vector<1x30xf32> to vector<1x10xf32>
    %294 = arith.mulf %293, %2 : vector<1x10xf32>
    %cst_88 = arith.constant dense<0.000000e+00> : vector<1xf32>
    %295 = vector.multi_reduction <add>, %294, %cst_88 [1] : vector<1x10xf32> to vector<1xf32>
    %296 = vector.shape_cast %295 : vector<1xf32> to vector<1x1xf32>
    %297 = vector.extract_strided_slice %1 {offsets = [0, 120], sizes = [1, 1], strides = [1, 1]} : vector<1x128xf32> to vector<1x1xf32>
    %298 = arith.addf %296, %297 : vector<1x1xf32>
    %299 = tpu.concatenate %101, %129, %157, %185, %213, %241, %269, %298 in 1 : vector<1x1xf32>, vector<1x1xf32>, vector<1x1xf32>, vector<1x1xf32>, vector<1x1xf32>, vector<1x1xf32>, vector<1x1xf32>, vector<1x1xf32> -> vector<1x8xf32>
    %c0_89 = arith.constant 0 : index
    %c0_90 = arith.constant 0 : index
    %300 = vector.load %arg2[%c0_89, %c0_90] : memref<1x8xf32, #tpu.memory_space<vmem>>, vector<1x8xf32>
    tpu.vector_store %arg2[%c0_89, %c0_90], %299 {strides = array<i32>} : memref<1x8xf32, #tpu.memory_space<vmem>>, vector<1x8xf32>,
    return
  }
}

</mosaic_0001>

<bundles_post_ra>
// kernel: gen_rand_forward.1
= control target key start
LH: loop header
LB: loop body
LE: loop exit
PB: predicated region body
PF: predicated region fallthrough
CT: control target
= control target key end

     0   :  { %v1560_v3 = vmov 0.0|0.0   ;;  %vm1561_vm0 = vmmov 0   ;;  %v1562_v6 = vmov 0.0   ;;  %s1883_s0 = inlined_call_operand.vmem [shape: f32[10,20], index: 0, kind: input, shape index: {}]   ;;  %s1884_s1 = inlined_call_operand.vmem [shape: f32[64,128], index: 1, kind: input, shape index: {}]   ;;  %s1885_s2 = inlined_call_operand.hbm [shape: f32[1,8], index: 2, kind: output, shape index: {}]  }
   0x1   :  { %v12_v0 = vld [vmem:[%s1884_s1] sm:$0xff]  ;;  %v13_v1 = vld [vmem:[%s1884_s1 + $0x8] sm:$0xff]  ;;  %v14_v2 = vld [vmem:[%s1884_s1 + $0x10] sm:$0xff]  ;;  %1385 = vmatprep.subr.bf16.mxu0 %v1560_v3  ;;  %1229 = vmatprep.mubr.msk.f32.mxu0 %vm1561_vm0, %v1562_v6 }
   0x2   :  { %v1606_v4 = vpack.c.bf16 %v13_v1, %v12_v0  ;;  %v15_v5 = vld [vmem:[%s1884_s1 + $0x18] sm:$0xff]  ;;  %1394 = vmatprep.subr.bf16.mxu1 %v1560_v3  ;;  %1246 = vmatprep.mubr.msk.f32.mxu1 %vm1561_vm0, %v1562_v6 }
   0x3   :  { %v1617_v7 = vpack.c.bf16 %v15_v5, %v14_v2 }
   0x4   :  { %1387 = vmatpush3.bf16.msra.mxu0 %v1606_v4  ;;  %1396 = vmatpush3.bf16.msra.mxu1 %v1606_v4 }
   0x5   :  { %7 = vsyncpa [#allocation3], 0  ;;  %1388 = vmatprep.subr.bf16.mxu0 %v1560_v3  ;;  %v16_v8 = vld [vmem:[%s1884_s1 + $0x20] sm:$0xff]  ;;  %v17_v9 = vld [vmem:[%s1884_s1 + $0x28] sm:$0xff]  ;;  %1397 = vmatprep.subr.bf16.mxu1 %v1560_v3  ;;  %vm22_vm1 = vcmask 162816   ;;  %vm24_vm2 = vcmask 408576  }
   0x6   :  { %v1629_v10 = vpack.c.bf16 %v17_v9, %v16_v8  ;;  %v21_v11 = vld [vmem:[%s1883_s0] sm:$0x1]  ;;  %v1644_v13 = vld [vmem:[%s1884_s1 + $0x30] sm:$0xff]  ;;  %vm26_vm3 = vcmask 457728   ;;  %v1666_v15 = vld [vmem:[%s1884_s1 + $0x38] sm:$0x1] }
   0x7   :  { %v23_v12 = vsel %vm22_vm1, %v21_v11, 0.0  ;;  %s1563_s27 = smov 68   ;;  %s1564_s28 = smov 30   ;;  %vm124_vm4 = vcmask 80896   ;;  %v131_v34 = vld [vmem:[%s1883_s0 + $0x1] sm:$0x1] }
   0x8   :  { %1390 = vmatpush3.bf16.msra.mxu0 %v1617_v7  ;;  %1399 = vmatpush3.bf16.msra.mxu1 %v1617_v7  ;;  %v25_v14 = vsel %vm24_vm2, %v23_v12, 0.0  ;;  %s1565_s29 = smov 60   ;;  %s1566_s30 = smov 38   ;;  %v245_v57 = vld [vmem:[%s1883_s0 + $0x2] sm:$0x1]  ;;  %vm1058_vm5 = vcmask 73728  }
   0x9   :  { %1391 = vmatprep.subr.bf16.mxu0 %v1560_v3  ;;  %1400 = vmatprep.subr.bf16.mxu1 %v1560_v3  ;;  %s1567_s3 = smov 98   ;;  %s1568_s4 = smov 20   ;;  %vm1095_vm6 = vcmask 7168   ;;  %vm1097_vm7 = vcmask 15360   ;;  %vm1099_vm8 = vcmask 23552   ;;  %vm1101_vm9 = vcmask 31744  }
   0xa   :  { %s1569_s9 = smov 58   ;;  %s1570_s25 = smov 110   ;;  %vm1103_vm10 = vcmask 39936   ;;  %vm1105_vm11 = vcmask 48128   ;;  %vm1107_vm12 = vcmask 56320   ;;  %vm1109_vm13 = vcmask 57344  }
   0xb   :  { %s1571_s26 = smov 18   ;;  %s1579_s5 = smov 15  }
   0xc   :  { %1393 = vmatpush3.bf16.msra.mxu0 %v1629_v10  ;;  %1402 = vmatpush3.bf16.msra.mxu1 %v1629_v10  ;;  %s1580_s6 = smov [#allocation2]  }
   0xd   :  { %1227 = vmatprep.subr.mxu0 %v1562_v6  ;;  %1244 = vmatprep.subr.mxu1 %v1562_v6  ;;  %s1117_s7 = sshll.u32 %s1580_s6, 4  ;;  %s1118_s7 = int_to_ptr.vmem [resolvable:$true] %s1117_s7 }
   0xe   :  { %s1536_s8 = scalar_lea.vmem %s1118_s7, 16  ;;  %p1541_p1 = scmp.lt.s32.totalorder %s1118_s7, %s1118_s7 }
   0xf   :  { %p1537_p0 = scmp.ne.s32.totalorder %s1118_s7, %s1536_s8 }
  0x10   :  { %1228 = vmatpush3.msra.mxu0 %v1644_v13  ;;  %1245 = vmatpush3.msra.mxu1 %v1644_v13 }
  0x11   :  { %1230 = vmatmul.mubr.msk.f32.vlgmr.msra.gmra.mrb[0].mxu0 %vm26_vm3, %v25_v14  ;;  %1403 = vmatprep.subr.bf16.mxu0 %v1560_v3 }
  0x12   :  { %1405 = vmatpush3.bf16.msra.mxu0 %v1606_v4  ;;  %1263 = vmatprep.mubr.msk.f32.mxu0 %vm1561_vm0, %v1562_v6 }
  0x13   :  { %1406 = vmatprep.subr.bf16.mxu0 %v1560_v3  ;;  %1412 = vmatprep.subr.bf16.mxu1 %v1560_v3 }
  0x16   :  { %1408 = vmatpush3.bf16.msra.mxu0 %v1617_v7 }
  0x17   :  { %1409 = vmatprep.subr.bf16.mxu0 %v1560_v3 }
  0x1a   :  { %1411 = vmatpush3.bf16.msra.mxu0 %v1629_v10 }
  0x1b   :  { %1261 = vmatprep.subr.mxu0 %v1562_v6 }
  0x1e   :  { %1262 = vmatpush3.msra.mxu0 %v1644_v13 }
  0x1f   :  { %1421 = vmatprep.subr.bf16.mxu0 %v1560_v3 }
  0xe4   :  { %v96_v16 = vpop.f32.mrb[0].mxu0 }
  0xe5   :  { %v97_v17 = vadd.f32 %v96_v16, %v1666_v15  ;;  %v1231_v18 = vpop.f32.mrb[1].mxu0 }
  0xe7   :  { %1496 = vtanh.f32 %v97_v17 }
  0xf1   :  { %v1497_v19 = vpop.eup %1496 }
  0xf2   :  { %105 = vrot.lane.b32.xlu0 %v1497_v19, %s1563_s27  ;;  %v101_v20 = vmul.f32 0.5, %v1497_v19  ;;  %v349_v19 = vld [vmem:[%s1883_s0 + $0x3] sm:$0x1] }
  0xf4   :  { %v102_v21 = vadd.f32 0.5, %v101_v20 }
  0xf6   :  { %v103_v24 = vmul.f32 0.0, %v102_v21 }
 0x164   :  { %v106_v22 = vpop.permute.xlu0 %105 }
 0x165   :  { %v108_v23 = vmul.f32 %v106_v22, %v102_v21 }
 0x167   :  { %110 = vrot.lane.b32.xlu0 %v108_v23, %s1564_s28 }
 0x1d9   :  { %v111_v25 = vpop.permute.xlu0 %110 }
 0x1da   :  { %v113_v26 = vadd.f32 %v111_v25, %v103_v24 }
 0x1dc   :  { %1498 = vtanh.f32 %v113_v26 }
 0x1e6   :  { %v1499_v27 = vpop.eup %1498 }
 0x1e7   :  { %116 = vrot.lane.b32.xlu1 %v1499_v27, %s1565_s29 }
 0x259   :  { %v117_v28 = vpop.permute.xlu1 %116 }
 0x25a   :  { %v119_v29 = vmul.f32 %v117_v28, %v102_v21 }
 0x25c   :  { %121 = vrot.lane.b32.xlu1 %v119_v29, %s1566_s30 }
 0x260   :  { %127 = vrot.lane.b32.xlu1 %v113_v26, %s1567_s3 }
 0x2ce   :  { %v122_v30 = vpop.permute.xlu1 %121 }
 0x2cf   :  { %v125_v31 = vsel %vm124_vm4, %v122_v30, 0.0 }
 0x2d0   :  { %133 = vrot.lane.b32.xlu0 %v125_v31, %s1568_s4 }
 0x2d2   :  { %v128_v32 = vpop.permute.xlu1 %127 }
 0x2d3   :  { %v130_v33 = vsel %vm124_vm4, %v128_v32, 0.0 }
 0x2d4   :  { %215 = vrot.lane.b32.xlu1 %v130_v33, %s1564_s28 }
 0x342   :  { %v134_v35 = vpop.permute.xlu0 %133 }
 0x343   :  { %v136_v36 = vsel %vm22_vm1, %v131_v34, %v134_v35 }
 0x344   :  { %v137_v37 = vsel %vm24_vm2, %v136_v36, 0.0 }
 0x345   :  { %1247 = vmatmul.mubr.msk.f32.vlgmr.msra.gmra.mrb[0].mxu1 %vm26_vm3, %v137_v37  ;;  %v449_v37 = vld [vmem:[%s1883_s0 + $0x4] sm:$0x1] }
 0x346   :  { %1414 = vmatpush3.bf16.msra.mxu1 %v1606_v4  ;;  %1280 = vmatprep.mubr.msk.f32.mxu1 %vm1561_vm0, %v1562_v6  ;;  %v216_v46 = vpop.permute.xlu1 %215 }
 0x347   :  { %1415 = vmatprep.subr.bf16.mxu1 %v1560_v3 }
 0x34a   :  { %1417 = vmatpush3.bf16.msra.mxu1 %v1617_v7 }
 0x34b   :  { %1418 = vmatprep.subr.bf16.mxu1 %v1560_v3 }
 0x34e   :  { %1420 = vmatpush3.bf16.msra.mxu1 %v1629_v10 }
 0x34f   :  { %1278 = vmatprep.subr.mxu1 %v1562_v6 }
 0x352   :  { %1279 = vmatpush3.msra.mxu1 %v1644_v13 }
 0x353   :  { %1430 = vmatprep.subr.bf16.mxu1 %v1560_v3 }
 0x418   :  { %v207_v38 = vpop.f32.mrb[0].mxu1 }
 0x419   :  { %v208_v39 = vadd.f32 %v207_v38, %v1666_v15  ;;  %v1248_v40 = vpop.f32.mrb[1].mxu1 }
 0x41b   :  { %1500 = vtanh.f32 %v208_v39 }
 0x425   :  { %v1501_v41 = vpop.eup %1500 }
 0x426   :  { %220 = vrot.lane.b32.xlu0 %v1501_v41, %s1563_s27  ;;  %v212_v42 = vmul.f32 0.5, %v1501_v41 }
 0x428   :  { %v213_v43 = vadd.f32 0.5, %v212_v42 }
 0x42a   :  { %v218_v47 = vmul.f32 %v216_v46, %v213_v43 }
 0x498   :  { %v221_v44 = vpop.permute.xlu0 %220 }
 0x499   :  { %v223_v45 = vmul.f32 %v221_v44, %v213_v43 }
 0x49b   :  { %225 = vrot.lane.b32.xlu0 %v223_v45, %s1564_s28 }
 0x50d   :  { %v226_v48 = vpop.permute.xlu0 %225 }
 0x50e   :  { %v228_v49 = vadd.f32 %v226_v48, %v218_v47 }
 0x510   :  { %1502 = vtanh.f32 %v228_v49 }
 0x51a   :  { %v1503_v50 = vpop.eup %1502 }
 0x51b   :  { %231 = vrot.lane.b32.xlu1 %v1503_v50, %s1565_s29 }
 0x58d   :  { %v232_v51 = vpop.permute.xlu1 %231 }
 0x58e   :  { %v234_v52 = vmul.f32 %v232_v51, %v213_v43 }
 0x590   :  { %236 = vrot.lane.b32.xlu0 %v234_v52, %s1566_s30  ;;  %s1575_s30 = smov 11  }
 0x594   :  { %241 = vrot.lane.b32.xlu0 %v228_v49, %s1567_s3  ;;  %s1576_s3 = smov 12  }
 0x602   :  { %v237_v53 = vpop.permute.xlu0 %236 }
 0x603   :  { %v239_v54 = vsel %vm22_vm1, %v237_v53, 0.0 }
 0x604   :  { %247 = vrot.lane.b32.xlu1 %v239_v54, %s1568_s4  ;;  %s1578_s4 = smov 14  }
 0x606   :  { %v242_v55 = vpop.permute.xlu0 %241 }
 0x607   :  { %v244_v56 = vsel %vm22_vm1, %v242_v55, 0.0  ;;  %v549_v55 = vld [vmem:[%s1883_s0 + $0x5] sm:$0x1] }
 0x608   :  { %329 = vrot.lane.b32.xlu0 %v244_v56, %s1564_s28 }
 0x676   :  { %v248_v58 = vpop.permute.xlu1 %247 }
 0x677   :  { %v250_v59 = vsel %vm22_vm1, %v245_v57, %v248_v58 }
 0x678   :  { %v251_v60 = vsel %vm24_vm2, %v250_v59, 0.0 }
 0x679   :  { %1264 = vmatmul.mubr.msk.f32.vlgmr.msra.gmra.mrb[2].mxu0 %vm26_vm3, %v251_v60 }
 0x67a   :  { %1423 = vmatpush3.bf16.msra.mxu0 %v1606_v4  ;;  %1297 = vmatprep.mubr.msk.f32.mxu0 %vm1561_vm0, %v1562_v6  ;;  %v330_v9 = vpop.permute.xlu0 %329 }
 0x67b   :  { %1424 = vmatprep.subr.bf16.mxu0 %v1560_v3 }
 0x67e   :  { %1426 = vmatpush3.bf16.msra.mxu0 %v1617_v7 }
 0x67f   :  { %1427 = vmatprep.subr.bf16.mxu0 %v1560_v3 }
 0x682   :  { %1429 = vmatpush3.bf16.msra.mxu0 %v1629_v10 }
 0x683   :  { %1295 = vmatprep.subr.mxu0 %v1562_v6 }
 0x686   :  { %1296 = vmatpush3.msra.mxu0 %v1644_v13 }
 0x687   :  { %1439 = vmatprep.subr.bf16.mxu0 %v1560_v3 }
 0x74c   :  { %v321_v61 = vpop.f32.mrb[2].mxu0 }
 0x74d   :  { %v322_v62 = vadd.f32 %v321_v61, %v1666_v15  ;;  %v1265_v63 = vpop.f32.mrb[3].mxu0 }
 0x74f   :  { %1504 = vtanh.f32 %v322_v62 }
 0x759   :  { %v1505_v0 = vpop.eup %1504 }
 0x75a   :  { %334 = vrot.lane.b32.xlu1 %v1505_v0, %s1563_s27  ;;  %v326_v1 = vmul.f32 0.5, %v1505_v0 }
 0x75c   :  { %v327_v2 = vadd.f32 0.5, %v326_v1 }
 0x75e   :  { %v332_v11 = vmul.f32 %v330_v9, %v327_v2 }
 0x7cc   :  { %v335_v5 = vpop.permute.xlu1 %334 }
 0x7cd   :  { %v337_v8 = vmul.f32 %v335_v5, %v327_v2 }
 0x7cf   :  { %339 = vrot.lane.b32.xlu1 %v337_v8, %s1564_s28 }
 0x841   :  { %v340_v12 = vpop.permute.xlu1 %339 }
 0x842   :  { %v342_v14 = vadd.f32 %v340_v12, %v332_v11 }
 0x844   :  { %1506 = vtanh.f32 %v342_v14 }
 0x84e   :  { %v1507_v16 = vpop.eup %1506 }
 0x84f   :  { %345 = vrot.lane.b32.xlu0 %v1507_v16, %s1565_s29  ;;  %v649_v16 = vld [vmem:[%s1883_s0 + $0x6] sm:$0x1] }
 0x8c1   :  { %v346_v17 = vpop.permute.xlu0 %345 }
 0x8c2   :  { %v348_v18 = vmul.f32 %v346_v17, %v327_v2 }
 0x8c4   :  { %351 = vrot.lane.b32.xlu1 %v348_v18, %s1569_s9 }
 0x936   :  { %v352_v20 = vpop.permute.xlu1 %351 }
 0x937   :  { %v354_v21 = vsel %vm22_vm1, %v349_v19, %v352_v20 }
 0x938   :  { %v355_v22 = vsel %vm24_vm2, %v354_v21, 0.0 }
 0x939   :  { %1281 = vmatmul.mubr.msk.f32.vlgmr.msra.gmra.mrb[2].mxu1 %vm26_vm3, %v355_v22 }
 0x93a   :  { %1432 = vmatpush3.bf16.msra.mxu1 %v1606_v4  ;;  %1314 = vmatprep.mubr.msk.f32.mxu1 %vm1561_vm0, %v1562_v6 }
 0x93b   :  { %1433 = vmatprep.subr.bf16.mxu1 %v1560_v3 }
 0x93e   :  { %1435 = vmatpush3.bf16.msra.mxu1 %v1617_v7 }
 0x93f   :  { %1436 = vmatprep.subr.bf16.mxu1 %v1560_v3 }
 0x942   :  { %1438 = vmatpush3.bf16.msra.mxu1 %v1629_v10 }
 0x943   :  { %1312 = vmatprep.subr.mxu1 %v1562_v6 }
 0x946   :  { %1313 = vmatpush3.msra.mxu1 %v1644_v13 }
 0x947   :  { %1448 = vmatprep.subr.bf16.mxu1 %v1560_v3 }
 0xa0c   :  { %v425_v23 = vpop.f32.mrb[2].mxu1 }
 0xa0d   :  { %v1740_v24 = vadd.f32 %v425_v23, %v1666_v15  ;;  %v1282_v25 = vpop.f32.mrb[3].mxu1 }
 0xa0f   :  { %1508 = vtanh.f32 %v1740_v24 }
 0xa19   :  { %v1509_v26 = vpop.eup %1508 }
 0xa1a   :  { %434 = vrot.lane.b32.xlu0 %v1509_v26, %s1563_s27  ;;  %v430_v27 = vmul.f32 0.5, %v1509_v26 }
 0xa1c   :  { %v431_v28 = vadd.f32 0.5, %v430_v27 }
 0xa1e   :  { %v432_v31 = vmul.f32 %v431_v28, %v342_v14 }
 0xa8c   :  { %v435_v29 = vpop.permute.xlu0 %434 }
 0xa8d   :  { %v437_v30 = vmul.f32 %v435_v29, %v431_v28 }
 0xa8f   :  { %439 = vrot.lane.b32.xlu1 %v437_v30, %s1564_s28 }
 0xb01   :  { %v440_v32 = vpop.permute.xlu1 %439 }
 0xb02   :  { %v442_v33 = vadd.f32 %v440_v32, %v432_v31 }
 0xb04   :  { %1510 = vtanh.f32 %v442_v33 }
 0xb0e   :  { %v1511_v34 = vpop.eup %1510 }
 0xb0f   :  { %445 = vrot.lane.b32.xlu0 %v1511_v34, %s1565_s29 }
 0xb81   :  { %v446_v35 = vpop.permute.xlu0 %445 }
 0xb82   :  { %v448_v36 = vmul.f32 %v446_v35, %v431_v28  ;;  %v749_v35 = vld [vmem:[%s1883_s0 + $0x7] sm:$0x1] }
 0xb84   :  { %451 = vrot.lane.b32.xlu1 %v448_v36, %s1569_s9 }
 0xbf6   :  { %v452_v38 = vpop.permute.xlu1 %451 }
 0xbf7   :  { %v454_v39 = vsel %vm22_vm1, %v449_v37, %v452_v38 }
 0xbf8   :  { %v455_v40 = vsel %vm24_vm2, %v454_v39, 0.0 }
 0xbf9   :  { %1298 = vmatmul.mubr.msk.f32.vlgmr.msra.gmra.mrb[4].mxu0 %vm26_vm3, %v455_v40 }
 0xbfa   :  { %1441 = vmatpush3.bf16.msra.mxu0 %v1606_v4  ;;  %1331 = vmatprep.mubr.msk.f32.mxu0 %vm1561_vm0, %v1562_v6 }
 0xbfb   :  { %1442 = vmatprep.subr.bf16.mxu0 %v1560_v3 }
 0xbfe   :  { %1444 = vmatpush3.bf16.msra.mxu0 %v1617_v7 }
 0xbff   :  { %1445 = vmatprep.subr.bf16.mxu0 %v1560_v3 }
 0xc02   :  { %1447 = vmatpush3.bf16.msra.mxu0 %v1629_v10 }
 0xc03   :  { %1329 = vmatprep.subr.mxu0 %v1562_v6 }
 0xc06   :  { %1330 = vmatpush3.msra.mxu0 %v1644_v13 }
 0xc07   :  { %1457 = vmatprep.subr.bf16.mxu0 %v1560_v3 }
 0xccc   :  { %v525_v41 = vpop.f32.mrb[4].mxu0 }
 0xccd   :  { %v1764_v42 = vadd.f32 %v525_v41, %v1666_v15  ;;  %v1299_v43 = vpop.f32.mrb[5].mxu0 }
 0xccf   :  { %1512 = vtanh.f32 %v1764_v42 }
 0xcd9   :  { %v1513_v44 = vpop.eup %1512 }
 0xcda   :  { %534 = vrot.lane.b32.xlu0 %v1513_v44, %s1563_s27  ;;  %v530_v45 = vmul.f32 0.5, %v1513_v44 }
 0xcdc   :  { %v531_v46 = vadd.f32 0.5, %v530_v45 }
 0xcde   :  { %v532_v49 = vmul.f32 %v531_v46, %v442_v33 }
 0xd4c   :  { %v535_v47 = vpop.permute.xlu0 %534 }
 0xd4d   :  { %v537_v48 = vmul.f32 %v535_v47, %v531_v46 }
 0xd4f   :  { %539 = vrot.lane.b32.xlu1 %v537_v48, %s1564_s28  ;;  %v849_v48 = vld [vmem:[%s1883_s0 + $0x8] sm:$0x1] }
 0xdc1   :  { %v540_v50 = vpop.permute.xlu1 %539 }
 0xdc2   :  { %v542_v51 = vadd.f32 %v540_v50, %v532_v49 }
 0xdc4   :  { %1514 = vtanh.f32 %v542_v51 }
 0xdce   :  { %v1515_v52 = vpop.eup %1514 }
 0xdcf   :  { %545 = vrot.lane.b32.xlu0 %v1515_v52, %s1565_s29 }
 0xe41   :  { %v546_v53 = vpop.permute.xlu0 %545 }
 0xe42   :  { %v548_v54 = vmul.f32 %v546_v53, %v531_v46 }
 0xe44   :  { %551 = vrot.lane.b32.xlu1 %v548_v54, %s1569_s9 }
 0xeb6   :  { %v552_v56 = vpop.permute.xlu1 %551 }
 0xeb7   :  { %v554_v57 = vsel %vm22_vm1, %v549_v55, %v552_v56 }
 0xeb8   :  { %v555_v58 = vsel %vm24_vm2, %v554_v57, 0.0 }
 0xeb9   :  { %1315 = vmatmul.mubr.msk.f32.vlgmr.msra.gmra.mrb[4].mxu1 %vm26_vm3, %v555_v58 }
 0xeba   :  { %1450 = vmatpush3.bf16.msra.mxu1 %v1606_v4  ;;  %1348 = vmatprep.mubr.msk.f32.mxu1 %vm1561_vm0, %v1562_v6 }
 0xebb   :  { %1451 = vmatprep.subr.bf16.mxu1 %v1560_v3 }
 0xebe   :  { %1453 = vmatpush3.bf16.msra.mxu1 %v1617_v7 }
 0xebf   :  { %1454 = vmatprep.subr.bf16.mxu1 %v1560_v3 }
 0xec2   :  { %1456 = vmatpush3.bf16.msra.mxu1 %v1629_v10 }
 0xec3   :  { %1346 = vmatprep.subr.mxu1 %v1562_v6 }
 0xec6   :  { %1347 = vmatpush3.msra.mxu1 %v1644_v13 }
 0xec7   :  { %1466 = vmatprep.subr.bf16.mxu1 %v1560_v3 }
 0xf8c   :  { %v625_v59 = vpop.f32.mrb[4].mxu1 }
 0xf8d   :  { %v1788_v60 = vadd.f32 %v625_v59, %v1666_v15  ;;  %v1316_v61 = vpop.f32.mrb[5].mxu1 }
 0xf8f   :  { %1516 = vtanh.f32 %v1788_v60 }
 0xf99   :  { %v1517_v62 = vpop.eup %1516 }
 0xf9a   :  { %634 = vrot.lane.b32.xlu0 %v1517_v62, %s1563_s27  ;;  %v630_v63 = vmul.f32 0.5, %v1517_v62 }
 0xf9c   :  { %v631_v0 = vadd.f32 0.5, %v630_v63 }
 0xf9e   :  { %v632_v5 = vmul.f32 %v631_v0, %v542_v51 }
0x100c   :  { %v635_v1 = vpop.permute.xlu0 %634 }
0x100d   :  { %v637_v2 = vmul.f32 %v635_v1, %v631_v0 }
0x100f   :  { %639 = vrot.lane.b32.xlu1 %v637_v2, %s1564_s28 }
0x1081   :  { %v640_v8 = vpop.permute.xlu1 %639 }
0x1082   :  { %v642_v9 = vadd.f32 %v640_v8, %v632_v5  ;;  %v949_v5 = vld [vmem:[%s1883_s0 + $0x9] sm:$0x1] }
0x1084   :  { %1518 = vtanh.f32 %v642_v9 }
0x108e   :  { %v1519_v11 = vpop.eup %1518 }
0x108f   :  { %645 = vrot.lane.b32.xlu0 %v1519_v11, %s1565_s29 }
0x1101   :  { %v646_v12 = vpop.permute.xlu0 %645 }
0x1102   :  { %v648_v14 = vmul.f32 %v646_v12, %v631_v0 }
0x1104   :  { %651 = vrot.lane.b32.xlu1 %v648_v14, %s1569_s9 }
0x1176   :  { %v652_v17 = vpop.permute.xlu1 %651 }
0x1177   :  { %v654_v18 = vsel %vm22_vm1, %v649_v16, %v652_v17 }
0x1178   :  { %v655_v19 = vsel %vm24_vm2, %v654_v18, 0.0 }
0x1179   :  { %1332 = vmatmul.mubr.msk.f32.vlgmr.msra.gmra.mrb[6].mxu0 %vm26_vm3, %v655_v19 }
0x117a   :  { %1459 = vmatpush3.bf16.msra.mxu0 %v1606_v4  ;;  %1365 = vmatprep.mubr.msk.f32.mxu0 %vm1561_vm0, %v1562_v6 }
0x117b   :  { %1460 = vmatprep.subr.bf16.mxu0 %v1560_v3 }
0x117e   :  { %1462 = vmatpush3.bf16.msra.mxu0 %v1617_v7 }
0x117f   :  { %1463 = vmatprep.subr.bf16.mxu0 %v1560_v3 }
0x1182   :  { %1465 = vmatpush3.bf16.msra.mxu0 %v1629_v10 }
0x1183   :  { %1363 = vmatprep.subr.mxu0 %v1562_v6 }
0x1186   :  { %1364 = vmatpush3.msra.mxu0 %v1644_v13 }
0x124c   :  { %v725_v20 = vpop.f32.mrb[6].mxu0 }
0x124d   :  { %v1811_v21 = vadd.f32 %v725_v20, %v1666_v15  ;;  %v1333_v22 = vpop.f32.mrb[7].mxu0 }
0x124f   :  { %1520 = vtanh.f32 %v1811_v21 }
0x1259   :  { %v1521_v23 = vpop.eup %1520 }
0x125a   :  { %734 = vrot.lane.b32.xlu0 %v1521_v23, %s1563_s27  ;;  %v730_v25 = vmul.f32 0.5, %v1521_v23  ;;  %v20_v23 = vld [vmem:[%s1884_s1 + $0x39] sm:$0x1]  ;;  %s1574_s1 = smov 10  }
0x125c   :  { %v731_v26 = vadd.f32 0.5, %v730_v25 }
0x125e   :  { %v732_v29 = vmul.f32 %v731_v26, %v642_v9 }
0x12cc   :  { %v735_v27 = vpop.permute.xlu0 %734 }
0x12cd   :  { %v737_v28 = vmul.f32 %v735_v27, %v731_v26 }
0x12cf   :  { %739 = vrot.lane.b32.xlu1 %v737_v28, %s1564_s28 }
0x1341   :  { %v740_v30 = vpop.permute.xlu1 %739 }
0x1342   :  { %v742_v31 = vadd.f32 %v740_v30, %v732_v29 }
0x1344   :  { %1522 = vtanh.f32 %v742_v31 }
0x134e   :  { %v1523_v32 = vpop.eup %1522 }
0x134f   :  { %745 = vrot.lane.b32.xlu0 %v1523_v32, %s1565_s29 }
0x13c1   :  { %v746_v33 = vpop.permute.xlu0 %745 }
0x13c2   :  { %v748_v34 = vmul.f32 %v746_v33, %v731_v26 }
0x13c4   :  { %751 = vrot.lane.b32.xlu1 %v748_v34, %s1569_s9 }
0x1436   :  { %v752_v36 = vpop.permute.xlu1 %751 }
0x1437   :  { %v754_v37 = vsel %vm22_vm1, %v749_v35, %v752_v36 }
0x1438   :  { %v755_v38 = vsel %vm24_vm2, %v754_v37, 0.0 }
0x1439   :  { %1349 = vmatmul.mubr.msk.f32.vlgmr.msra.gmra.mrb[6].mxu1 %vm26_vm3, %v755_v38 }
0x143a   :  { %1468 = vmatpush3.bf16.msra.mxu1 %v1606_v4  ;;  %1382 = vmatprep.mubr.msk.f32.mxu1 %vm1561_vm0, %v1562_v6 }
0x143b   :  { %1469 = vmatprep.subr.bf16.mxu1 %v1560_v3 }
0x143e   :  { %1471 = vmatpush3.bf16.msra.mxu1 %v1617_v7 }
0x143f   :  { %1472 = vmatprep.subr.bf16.mxu1 %v1560_v3 }
0x1442   :  { %1474 = vmatpush3.bf16.msra.mxu1 %v1629_v10 }
0x1443   :  { %1380 = vmatprep.subr.mxu1 %v1562_v6 }
0x1446   :  { %1381 = vmatpush3.msra.mxu1 %v1644_v13 }
0x150c   :  { %v825_v39 = vpop.f32.mrb[6].mxu1 }
0x150d   :  { %v1834_v40 = vadd.f32 %v825_v39, %v1666_v15  ;;  %v1350_v4 = vpop.f32.mrb[7].mxu1 }
0x150f   :  { %1524 = vtanh.f32 %v1834_v40 }
0x1519   :  { %v1525_v41 = vpop.eup %1524 }
0x151a   :  { %834 = vrot.lane.b32.xlu0 %v1525_v41, %s1563_s27  ;;  %v830_v43 = vmul.f32 0.5, %v1525_v41 }
0x151c   :  { %v831_v7 = vadd.f32 0.5, %v830_v43 }
0x151e   :  { %v832_v10 = vmul.f32 %v831_v7, %v742_v31 }
0x158c   :  { %v835_v44 = vpop.permute.xlu0 %834 }
0x158d   :  { %v837_v3 = vmul.f32 %v835_v44, %v831_v7 }
0x158f   :  { %839 = vrot.lane.b32.xlu1 %v837_v3, %s1564_s28 }
0x1601   :  { %v840_v6 = vpop.permute.xlu1 %839 }
0x1602   :  { %v842_v45 = vadd.f32 %v840_v6, %v832_v10 }
0x1604   :  { %1526 = vtanh.f32 %v842_v45 }
0x160e   :  { %v1527_v13 = vpop.eup %1526 }
0x160f   :  { %845 = vrot.lane.b32.xlu0 %v1527_v13, %s1565_s29 }
0x1681   :  { %v846_v46 = vpop.permute.xlu0 %845 }
0x1682   :  { %v848_v47 = vmul.f32 %v846_v46, %v831_v7 }
0x1684   :  { %851 = vrot.lane.b32.xlu1 %v848_v47, %s1569_s9 }
0x16f6   :  { %v852_v49 = vpop.permute.xlu1 %851 }
0x16f7   :  { %v854_v50 = vsel %vm22_vm1, %v849_v48, %v852_v49 }
0x16f8   :  { %v855_v51 = vsel %vm24_vm2, %v854_v50, 0.0 }
0x16f9   :  { %1366 = vmatmul.mubr.msk.f32.vlgmr.msra.gmra.mrb[8].mxu0 %vm26_vm3, %v855_v51 }
0x17cc   :  { %v925_v52 = vpop.f32.mrb[8].mxu0 }
0x17cd   :  { %v926_v53 = vadd.f32 %v925_v52, %v1666_v15  ;;  %v1367_v54 = vpop.f32.mrb[9].mxu0 }
0x17cf   :  { %1528 = vtanh.f32 %v926_v53 }
0x17d9   :  { %v1529_v55 = vpop.eup %1528 }
0x17da   :  { %934 = vrot.lane.b32.xlu0 %v1529_v55, %s1563_s27  ;;  %v930_v56 = vmul.f32 0.5, %v1529_v55 }
0x17dc   :  { %v931_v57 = vadd.f32 0.5, %v930_v56 }
0x17de   :  { %v932_v61 = vmul.f32 %v931_v57, %v842_v45 }
0x184c   :  { %v935_v58 = vpop.permute.xlu0 %934 }
0x184d   :  { %v937_v59 = vmul.f32 %v935_v58, %v931_v57 }
0x184f   :  { %939 = vrot.lane.b32.xlu1 %v937_v59, %s1564_s28 }
0x18c1   :  { %v940_v62 = vpop.permute.xlu1 %939 }
0x18c2   :  { %v942_v63 = vadd.f32 %v940_v62, %v932_v61 }
0x18c4   :  { %1530 = vtanh.f32 %v942_v63 }
0x18ce   :  { %v1531_v0 = vpop.eup %1530 }
0x18cf   :  { %945 = vrot.lane.b32.xlu0 %v1531_v0, %s1565_s29 }
0x1941   :  { %v946_v1 = vpop.permute.xlu0 %945 }
0x1942   :  { %v948_v2 = vmul.f32 %v946_v1, %v931_v57 }
0x1944   :  { %951 = vrot.lane.b32.xlu1 %v948_v2, %s1569_s9  ;;  %s1540_s9 = scalar_lea.vmem %s1118_s7, 32 }
0x1945   :  { %p1542_p2 = scmp.lt.s32.totalorder %s1540_s9, %s1536_s8 }
0x1947   :  { %p1543_p3 = por %p1542_p2, %p1541_p1 }
0x1949   :  { %p1544_p4 = pnand %p1543_p3, %p1537_p0 }
0x19b6   :  { %v952_v8 = vpop.permute.xlu1 %951 }
0x19b7   :  { %v954_v9 = vsel %vm22_vm1, %v949_v5, %v952_v8 }
0x19b8   :  { %v955_v11 = vsel %vm24_vm2, %v954_v9, 0.0 }
0x19b9   :  { %1383 = vmatmul.mubr.msk.f32.vlgmr.msra.gmra.mrb[8].mxu1 %vm26_vm3, %v955_v11 }
0x1a8c   :  { %v1025_v12 = vpop.f32.mrb[8].mxu1 }
0x1a8d   :  { %v1026_v14 = vadd.f32 %v1025_v12, %v1666_v15  ;;  %v1384_v16 = vpop.f32.mrb[9].mxu1 }
0x1a8f   :  { %1532 = vtanh.f32 %v1026_v14 }
0x1a99   :  { %v1533_v17 = vpop.eup %1532 }
0x1a9a   :  { %1034 = vrot.lane.b32.xlu0 %v1533_v17, %s1563_s27  ;;  %v1030_v18 = vmul.f32 0.5, %v1533_v17  ;;  %s1572_s27 = smov 8  }
0x1a9c   :  { %v1031_v19 = vadd.f32 0.5, %v1030_v18 }
0x1a9e   :  { %v1032_v25 = vmul.f32 %v1031_v19, %v942_v63 }
0x1b0c   :  { %v1035_v20 = vpop.permute.xlu0 %1034 }
0x1b0d   :  { %v1037_v22 = vmul.f32 %v1035_v20, %v1031_v19 }
0x1b0f   :  { %1039 = vrot.lane.b32.xlu1 %v1037_v22, %s1564_s28  ;;  %s1573_s28 = smov 9  }
0x1b13   :  { %1050 = vrot.lane.b32.xlu1 %v20_v23, %s1570_s25 }
0x1b81   :  { %v1040_v26 = vpop.permute.xlu1 %1039 }
0x1b82   :  { %v1042_v27 = vadd.f32 %v1040_v26, %v1032_v25 }
0x1b84   :  { %1534 = vtanh.f32 %v1042_v27 }
0x1b85   :  { %v1051_v30 = vpop.permute.xlu1 %1050 }
0x1b8e   :  { %v1535_v28 = vpop.eup %1534 }
0x1b8f   :  { %1045 = vrot.lane.b32.xlu0 %v1535_v28, %s1565_s29  ;;  %s1577_s29 = smov 13  }
0x1c01   :  { %v1046_v29 = vpop.permute.xlu0 %1045 }
0x1c02   :  { %v1048_v31 = vmul.f32 %v1046_v29, %v1031_v19 }
0x1c04   :  { %v1053_v32 = vmul.f32 %v1051_v30, %v1048_v31 }
0x1c06   :  { %1055 = vrot.lane.b32.xlu0 %v1053_v32, %s1571_s26 }
0x1c0a   :  { %1064 = vrot.lane.b32.xlu0 %v1740_v24, %s1572_s27 }
0x1c0e   :  { %1068 = vrot.lane.b32.xlu0 %v1764_v42, %s1573_s28 }
0x1c12   :  { %1072 = vrot.lane.b32.xlu0 %v1788_v60, %s1574_s1 }
0x1c16   :  { %1076 = vrot.lane.b32.xlu0 %v1811_v21, %s1575_s30 }
0x1c1a   :  { %1080 = vrot.lane.b32.xlu0 %v1834_v40, %s1576_s3 }
0x1c1e   :  { %1084 = vrot.lane.b32.xlu0 %v926_v53, %s1577_s29 }
0x1c22   :  { %1088 = vrot.lane.b32.xlu0 %v1026_v14, %s1578_s4 }
0x1c78   :  { %v1056_v33 = vpop.permute.xlu0 %1055 }
0x1c79   :  { %v1059_v34 = vsel %vm1058_vm5, %v1056_v33, 0.0 }
0x1c7a   :  { %1060 = vadd.xlane.f32.xlu1 %v1059_v34 }
0x1c7c   :  { %v1065_v60 = vpop.permute.xlu0 %1064 }
0x1c80   :  { %v1069_v35 = vpop.permute.xlu0 %1068 }
0x1c81   :  { %v1096_v39 = vsel %vm1095_vm6, %v1065_v60, %v1069_v35 }
0x1c84   :  { %v1073_v36 = vpop.permute.xlu0 %1072 }
0x1c85   :  { %v1098_v40 = vsel %vm1097_vm7, %v1096_v39, %v1073_v36 }
0x1c88   :  { %v1077_v21 = vpop.permute.xlu0 %1076 }
0x1c89   :  { %v1100_v41 = vsel %vm1099_vm8, %v1098_v40, %v1077_v21 }
0x1c8c   :  { %v1081_v37 = vpop.permute.xlu0 %1080 }
0x1c90   :  { %v1085_v38 = vpop.permute.xlu0 %1084 }
0x1c94   :  { %v1089_v4 = vpop.permute.xlu0 %1088 }
0x1d07   :  { %v1061_v24 = vpop.xlane.xlu1 %1060 }
0x1d08   :  { %v1062_v42 = vadd.f32 %v1061_v24, %v1666_v15  ;;  %v1102_v15 = vsel %vm1101_vm9, %v1100_v41, %v1081_v37 }
0x1d09   :  { %v1104_v43 = vsel %vm1103_vm10, %v1102_v15, %v1085_v38 }
0x1d0a   :  { %1092 = vrot.lane.b32.xlu0 %v1062_v42, %s1579_s5  ;;  %v1106_v7 = vsel %vm1105_vm11, %v1104_v43, %v1089_v4 }
0x1d7c   :  { %v1093_v44 = vpop.permute.xlu0 %1092 }
0x1d7d   :  { %v1108_v3 = vsel %vm1107_vm12, %v1106_v7, %v1093_v44 }
0x1d7e   :  { %1110 = vst.msk [vmem:[#allocation2] sm:$0x1] %vm1109_vm13, %v1108_v3 }
0x1d7f   :  { %1547 = shalt.err (!%p1544_p4)
}
0x1d80   :  { %s1548_s12 = scalar_lea.hbm %s1885_s2, 16 }
0x1d81   :  { %p1549_p5 = scmp.ne.s32.totalorder %s1885_s2, %s1548_s12  ;;  %p1552_p6 = scmp.lt.u32.totalorder %s1548_s12, %s1885_s2 }
0x1d83   :  { %p1554_p7 = pnand %p1552_p6, %p1549_p5 }
0x1d85   :  { %1557 = shalt.err (!%p1554_p7)
}
0x1d86   :  { %1120 = dma.vmem_to_hbm [thread:$0]  %s1118_s7, 16, %s1885_s2, [#allocation3]  }
0x1d87   :  { %1558 = dma.done.wait [#allocation3], 16  }
0x1d88   :  { %1559 = vsyncadd [#allocation3], 4294967280 }
0x1d89   :  { %1124 = vsyncpa [#allocation3], 1 }

</bundles_post_ra>
